<compile_context>
chip_gen: v6e
topology: v6e:2x2x1
jax: 0.10.0
libtpu: 0.0.40
codegen_flags: <defaults>
</compile_context>

<pallas_src>
import functools

import jax
import jax.numpy as jnp
from jax import lax
from jax.experimental import pallas as pl
from jax.experimental.pallas import tpu as pltpu


def _resblock_kernel(p1_ref, w1sc_ref, w2_ref, prm_ref, out_ref, *, H, W, Cout):
    HW = H * W

    # fused conv1 (im2col) + 1x1x1 shortcut: (2*Cout, 9*Cin) @ (9*Cin, HW) -> (2*Cout, HW)
    fused = jnp.dot(w1sc_ref[...], p1_ref[...], preferred_element_type=jnp.float32)

    prm = prm_ref[...]                            # (Cout, 6), channels on sublanes
    s1, b1 = prm[:, 0:1], prm[:, 1:2]
    s2, b2 = prm[:, 2:3], prm[:, 3:4]
    ssc, bsc = prm[:, 4:5], prm[:, 5:6]

    y1 = fused[:Cout, :] * s1 + b1                # conv1 + BN1 (module has no ReLU here)
    sc = fused[Cout:, :] * ssc + bsc              # shortcut conv + BN

    # conv2 (3x3 'same' over H,W): build the (9*Cout, HW) shifted stack with lane
    # rolls + zero-padding edge masks, then one MXU dot with K = 9*Cout.
    p_idx = lax.broadcasted_iota(jnp.int32, (Cout, HW), 1)   # flat spatial index
    w_idx = p_idx % W                                        # column index within a row
    taps = []
    for dy in range(3):
        for dx in range(3):
            s = (dy - 1) * W + (dx - 1)
            if s == 0:
                taps.append(y1)
                continue
            # shifted[c, p] = y1[c, p + s]  (circular; out-of-range masked to zero)
            shifted = pltpu.roll(y1, shift=(-s) % HW, axis=1)
            valid = ((p_idx + s >= 0) & (p_idx + s < HW)
                     & (w_idx + (dx - 1) >= 0) & (w_idx + (dx - 1) < W))
            taps.append(jnp.where(valid, shifted, 0.0))
    stack = jnp.concatenate(taps, axis=0)                    # (9*Cout, HW)

    y2 = jnp.dot(w2_ref[...], stack, preferred_element_type=jnp.float32)  # (Cout, HW)
    conv_center = jnp.maximum(y2 * s2 + b2, 0.0)   # the real depth slice (d = 1)
    conv_outer = jnp.maximum(b2, 0.0)              # d = 0, 2: conv2 sees pure zero depth-padding

    # residual add (shortcut broadcasts over the depth axis) + final ReLU
    out_center = jnp.maximum(conv_center + sc, 0.0)
    out_outer = jnp.maximum(conv_outer + sc, 0.0)

    out_ref[0] = out_outer
    out_ref[1] = out_center
    out_ref[2] = out_outer


def residual_block_small(x_ncdhw, w1, w2, wsc, scales_shifts):
    N, Cin, D, H, W = x_ncdhw.shape
    assert D == 1, "residual add only broadcasts correctly for input depth == 1"
    Cout = w1.shape[-1]
    HW = H * W

    # ---- layout plumbing in the wrapper (XLA); kernel inputs are lane-dense ----
    # conv1 im2col, transposed so H*W sits on the 128-lane minor axis.
    x_nhwc = jnp.transpose(x_ncdhw[:, :, 0, :, :], (0, 2, 3, 1))        # (N, H, W, Cin)
    xpad = jnp.pad(x_nhwc, ((0, 0), (1, 1), (1, 1), (0, 0)))            # (N, H+2, W+2, Cin)
    cols = [xpad[:, dy:dy + H, dx:dx + W, :].reshape(N, HW, Cin)
            for dy in range(3) for dx in range(3)]
    patches1 = jnp.concatenate(cols, axis=-1)                           # (N, HW, 9*Cin)
    patches1_t = jnp.transpose(patches1, (0, 2, 1))                     # (N, 9*Cin, HW)

    # conv1 weight fused with the 1x1x1 shortcut (shortcut lives at the centre tap),
    # transposed so output channels sit on sublanes: (2*Cout, 9*Cin).
    w1_mat = w1.reshape(9 * Cin, Cout)
    wsc_mat = jnp.zeros((9 * Cin, Cout), w1.dtype).at[4 * Cin:5 * Cin, :].set(wsc)
    w1sc_t = jnp.transpose(jnp.concatenate([w1_mat, wsc_mat], axis=-1), (1, 0))

    w2_t = jnp.transpose(w2.reshape(9 * Cout, Cout), (1, 0))            # (Cout, 9*Cout)
    prm_t = jnp.transpose(scales_shifts, (1, 0))                        # (Cout, 6)

    kernel = functools.partial(_resblock_kernel, H=H, W=W, Cout=Cout)
    out = pl.pallas_call(
        kernel,
        out_shape=jax.ShapeDtypeStruct((N, 3, Cout, HW), jnp.float32),
        grid_spec=pltpu.PrefetchScalarGridSpec(
            num_scalar_prefetch=0,
            grid=(N,),
            in_specs=[
                pl.BlockSpec((None, 9 * Cin, HW), lambda n: (n, 0, 0)),
                pl.BlockSpec((2 * Cout, 9 * Cin), lambda n: (0, 0)),
                pl.BlockSpec((Cout, 9 * Cout), lambda n: (0, 0)),
                pl.BlockSpec((Cout, 6), lambda n: (0, 0)),
            ],
            out_specs=pl.BlockSpec((None, 3, Cout, HW), lambda n: (n, 0, 0, 0)),
        ),
        compiler_params=pltpu.CompilerParams(dimension_semantics=("parallel",)),
    )(patches1_t, w1sc_t, w2_t, prm_t)

    # back to PyTorch layout (N, Cout, D_out=3, H, W)
    out = out.reshape(N, 3, Cout, H, W)
    return jnp.transpose(out, (0, 2, 1, 3, 4))


def _reference(x, w1, w2, wsc, prm):
    """Pure-JAX replica of the PyTorch forward (eval-mode BN), NCDHW layout."""
    Cout = w1.shape[-1]
    s1, b1, s2, b2, ssc, bsc = [prm[i].reshape(1, Cout, 1, 1, 1) for i in range(6)]
    dn = ('NCDHW', 'OIDHW', 'NCDHW')
    hi = lax.Precision.HIGHEST
    w1_t = jnp.transpose(w1, (3, 2, 0, 1))[:, :, None, :, :]    # (Cout, Cin, 1, 3, 3)
    w2_t = jnp.transpose(w2, (3, 2, 0, 1))[:, :, None, :, :]
    wsc_t = jnp.transpose(wsc, (1, 0))[:, :, None, None, None]  # (Cout, Cin, 1, 1, 1)

    y = lax.conv_general_dilated(x, w1_t, (1, 1, 1), ((0, 0), (1, 1), (1, 1)),
                                 dimension_numbers=dn, precision=hi)
    y = y * s1 + b1
    y = lax.conv_general_dilated(y, w2_t, (1, 1, 1), ((1, 1), (1, 1), (1, 1)),
                                 dimension_numbers=dn, precision=hi)
    y = jnp.maximum(y * s2 + b2, 0.0)
    sc = lax.conv_general_dilated(x, wsc_t, (1, 1, 1), ((0, 0), (0, 0), (0, 0)),
                                  dimension_numbers=dn, precision=hi)
    sc = sc * ssc + bsc
    return jnp.maximum(y + sc, 0.0)          # shortcut broadcasts over depth (1 -> 3)


def _fold_bn(key, cout):
    k1, k2, k3, k4 = jax.random.split(key, 4)
    gamma = 1.0 + 0.1 * jax.random.normal(k1, (cout,), jnp.float32)
    beta = 0.1 * jax.random.normal(k2, (cout,), jnp.float32)
    mean = 0.1 * jax.random.normal(k3, (cout,), jnp.float32)
    var = 1.0 + 0.1 * jnp.abs(jax.random.normal(k4, (cout,), jnp.float32))
    scale = gamma / jnp.sqrt(var + 1e-5)
    shift = beta - mean * scale
    return scale, shift


if __name__ == "__main__":
    N, Cin, Cout, D, H, W = 2, 4, 8, 1, 16, 16   # stride=1, in != out -> projection shortcut

    key = jax.random.PRNGKey(0)
    kx, kw1, kw2, kwsc, kb1, kb2, kb3 = jax.random.split(key, 7)

    x = jax.random.normal(kx, (N, Cin, D, H, W), jnp.float32)
    w1 = 0.1 * jax.random.normal(kw1, (3, 3, Cin, Cout), jnp.float32)   # conv1 (kH,kW,Cin,Cout)
    w2 = 0.1 * jax.random.normal(kw2, (3, 3, Cout, Cout), jnp.float32)  # conv2
    wsc = 0.1 * jax.random.normal(kwsc, (Cin, Cout), jnp.float32)       # shortcut 1x1x1

    s1, b1 = _fold_bn(kb1, Cout)
    s2, b2 = _fold_bn(kb2, Cout)
    ssc, bsc = _fold_bn(kb3, Cout)
    prm = jnp.stack([s1, b1, s2, b2, ssc, bsc], axis=0)                 # (6, Cout)

    out = jax.jit(residual_block_small)(x, w1, w2, wsc, prm)
    out = jax.block_until_ready(out)

    ref = _reference(x, w1, w2, wsc, prm)
    assert out.shape == ref.shape == (N, Cout, 3, H, W)
    err = float(jnp.max(jnp.abs(out - ref)))
    assert err < 5e-3, f"mismatch vs reference: max abs err = {err}"

    print("KERNEL_OK")
</pallas_src>

<mosaic_0001>
module attributes {stable_mosaic.version = 11 : i64} {
  func.func @_resblock_kernel(%arg0: i32, %arg1: memref<1x36x256xf32, #tpu.memory_space<vmem>>, %arg2: memref<16x36xf32, #tpu.memory_space<vmem>>, %arg3: memref<8x72xf32, #tpu.memory_space<vmem>>, %arg4: memref<8x6xf32, #tpu.memory_space<vmem>>, %arg5: memref<1x3x8x256xf32, #tpu.memory_space<vmem>>) attributes {dimension_semantics = [#tpu.dimension_semantics<parallel>], iteration_bounds = array<i64: 2>, scalar_prefetch = 0 : i64, scratch_operands = 0 : i64, tpu.core_type = #tpu.core_type<tc>, window_params = [{transform_indices = @transform_0, window_bounds = array<i64: 1, 36, 256>}, {pipeline_mode = #tpu.pipeline_mode<synchronous>, transform_indices = @transform_1, window_bounds = array<i64: 16, 36>}, {pipeline_mode = #tpu.pipeline_mode<synchronous>, transform_indices = @transform_2, window_bounds = array<i64: 8, 72>}, {pipeline_mode = #tpu.pipeline_mode<synchronous>, transform_indices = @transform_3, window_bounds = array<i64: 8, 6>}, {transform_indices = @transform_4, window_bounds = array<i64: 1, 3, 8, 256>}]} {
    %c0 = arith.constant 0 : index
    %c0_0 = arith.constant 0 : index
    %0 = vector.load %arg2[%c0, %c0_0] : memref<16x36xf32, #tpu.memory_space<vmem>>, vector<16x36xf32>
    %c0_1 = arith.constant 0 : index
    %c0_2 = arith.constant 0 : index
    %c0_3 = arith.constant 0 : index
    %1 = vector.load %arg1[%c0_1, %c0_2, %c0_3] : memref<1x36x256xf32, #tpu.memory_space<vmem>>, vector<1x36x256xf32>
    %2 = vector.shape_cast %1 : vector<1x36x256xf32> to vector<36x256xf32>
    %cst = arith.constant dense<0.000000e+00> : vector<16x256xf32>
    %3 = tpu.matmul %0, %2, %cst {dimension_numbers = #tpu.dot_dimension_numbers<[1], [0], [0], [1], [0, 0, 1, 1], [], []>} : vector<16x36xf32>, vector<36x256xf32>, vector<16x256xf32> -> vector<16x256xf32>
    %c0_4 = arith.constant 0 : index
    %c0_5 = arith.constant 0 : index
    %4 = vector.load %arg4[%c0_4, %c0_5] : memref<8x6xf32, #tpu.memory_space<vmem>>, vector<8x6xf32>
    %5 = vector.extract_strided_slice %4 {offsets = [0, 0], sizes = [8, 1], strides = [1, 1]} : vector<8x6xf32> to vector<8x1xf32>
    %6 = vector.extract_strided_slice %4 {offsets = [0, 1], sizes = [8, 1], strides = [1, 1]} : vector<8x6xf32> to vector<8x1xf32>
    %7 = vector.extract_strided_slice %4 {offsets = [0, 2], sizes = [8, 1], strides = [1, 1]} : vector<8x6xf32> to vector<8x1xf32>
    %8 = vector.extract_strided_slice %4 {offsets = [0, 3], sizes = [8, 1], strides = [1, 1]} : vector<8x6xf32> to vector<8x1xf32>
    %9 = vector.extract_strided_slice %4 {offsets = [0, 4], sizes = [8, 1], strides = [1, 1]} : vector<8x6xf32> to vector<8x1xf32>
    %10 = vector.extract_strided_slice %4 {offsets = [0, 5], sizes = [8, 1], strides = [1, 1]} : vector<8x6xf32> to vector<8x1xf32>
    %11 = vector.extract_strided_slice %3 {offsets = [0, 0], sizes = [8, 256], strides = [1, 1]} : vector<16x256xf32> to vector<8x256xf32>
    %12 = vector.broadcast %5 : vector<8x1xf32> to vector<8x256xf32>
    %13 = arith.mulf %11, %12 : vector<8x256xf32>
    %14 = vector.broadcast %6 : vector<8x1xf32> to vector<8x256xf32>
    %15 = arith.addf %13, %14 : vector<8x256xf32>
    %16 = vector.extract_strided_slice %3 {offsets = [8, 0], sizes = [8, 256], strides = [1, 1]} : vector<16x256xf32> to vector<8x256xf32>
    %17 = vector.broadcast %9 : vector<8x1xf32> to vector<8x256xf32>
    %18 = arith.mulf %16, %17 : vector<8x256xf32>
    %19 = vector.broadcast %10 : vector<8x1xf32> to vector<8x256xf32>
    %20 = arith.addf %18, %19 : vector<8x256xf32>
    %21 = tpu.iota {dimensions = array<i32: 1>} : vector<8x256xi32>
    %c16_i32 = arith.constant 16 : i32
    %c0_i32 = arith.constant 0 : i32
    %22 = arith.cmpi eq, %c16_i32, %c0_i32 : i32
    %c1_i32 = arith.constant 1 : i32
    %23 = arith.select %22, %c1_i32, %c16_i32 : i32
    %24 = vector.broadcast %23 : i32 to vector<8x256xi32>
    %25 = arith.remsi %21, %24 : vector<8x256xi32>
    %c0_i32_6 = arith.constant 0 : i32
    %26 = vector.broadcast %c0_i32_6 : i32 to vector<8x256xi32>
    %27 = arith.cmpi ne, %25, %26 : vector<8x256xi32>
    %c0_i32_7 = arith.constant 0 : i32
    %28 = vector.broadcast %c0_i32_7 : i32 to vector<8x256xi32>
    %29 = arith.cmpi slt, %25, %28 : vector<8x256xi32>
    %c0_i32_8 = arith.constant 0 : i32
    %30 = arith.cmpi slt, %23, %c0_i32_8 : i32
    %31 = vector.broadcast %30 : i1 to vector<8x256xi1>
    %32 = vector.broadcast %31 : vector<8x256xi1> to vector<8x256xi1>
    %33 = arith.xori %29, %32 : vector<8x256xi1>
    %34 = arith.andi %33, %27 : vector<8x256xi1>
    %35 = vector.broadcast %23 : i32 to vector<8x256xi32>
    %36 = arith.addi %25, %35 : vector<8x256xi32>
    %37 = arith.select %34, %36, %25 : vector<8x256xi1>, vector<8x256xi32>
    %c17_i32 = arith.constant 17 : i32
    %38 = tpu.dynamic_rotate %15 by %c17_i32 dim 1 : vector<8x256xf32>, i32 -> vector<8x256xf32>
    %c-17_i32 = arith.constant -17 : i32
    %39 = vector.broadcast %c-17_i32 : i32 to vector<8x256xi32>
    %40 = arith.addi %21, %39 : vector<8x256xi32>
    %c0_i32_9 = arith.constant 0 : i32
    %41 = vector.broadcast %c0_i32_9 : i32 to vector<8x256xi32>
    %42 = arith.cmpi sge, %40, %41 : vector<8x256xi32>
    %c-17_i32_10 = arith.constant -17 : i32
    %43 = vector.broadcast %c-17_i32_10 : i32 to vector<8x256xi32>
    %44 = arith.addi %21, %43 : vector<8x256xi32>
    %c256_i32 = arith.constant 256 : i32
    %45 = vector.broadcast %c256_i32 : i32 to vector<8x256xi32>
    %46 = arith.cmpi slt, %44, %45 : vector<8x256xi32>
    %47 = arith.andi %42, %46 : vector<8x256xi1>
    %c-1_i32 = arith.constant -1 : i32
    %48 = vector.broadcast %c-1_i32 : i32 to vector<8x256xi32>
    %49 = arith.addi %37, %48 : vector<8x256xi32>
    %c0_i32_11 = arith.constant 0 : i32
    %50 = vector.broadcast %c0_i32_11 : i32 to vector<8x256xi32>
    %51 = arith.cmpi sge, %49, %50 : vector<8x256xi32>
    %52 = arith.andi %47, %51 : vector<8x256xi1>
    %c-1_i32_12 = arith.constant -1 : i32
    %53 = vector.broadcast %c-1_i32_12 : i32 to vector<8x256xi32>
    %54 = arith.addi %37, %53 : vector<8x256xi32>
    %c16_i32_13 = arith.constant 16 : i32
    %55 = vector.broadcast %c16_i32_13 : i32 to vector<8x256xi32>
    %56 = arith.cmpi slt, %54, %55 : vector<8x256xi32>
    %57 = arith.andi %52, %56 : vector<8x256xi1>
    %cst_14 = arith.constant 0.000000e+00 : f32
    %58 = vector.broadcast %cst_14 : f32 to vector<8x256xf32>
    %59 = arith.select %57, %38, %58 : vector<8x256xi1>, vector<8x256xf32>
    %c16_i32_15 = arith.constant 16 : i32
    %60 = tpu.dynamic_rotate %15 by %c16_i32_15 dim 1 : vector<8x256xf32>, i32 -> vector<8x256xf32>
    %c-16_i32 = arith.constant -16 : i32
    %61 = vector.broadcast %c-16_i32 : i32 to vector<8x256xi32>
    %62 = arith.addi %21, %61 : vector<8x256xi32>
    %c0_i32_16 = arith.constant 0 : i32
    %63 = vector.broadcast %c0_i32_16 : i32 to vector<8x256xi32>
    %64 = arith.cmpi sge, %62, %63 : vector<8x256xi32>
    %c-16_i32_17 = arith.constant -16 : i32
    %65 = vector.broadcast %c-16_i32_17 : i32 to vector<8x256xi32>
    %66 = arith.addi %21, %65 : vector<8x256xi32>
    %c256_i32_18 = arith.constant 256 : i32
    %67 = vector.broadcast %c256_i32_18 : i32 to vector<8x256xi32>
    %68 = arith.cmpi slt, %66, %67 : vector<8x256xi32>
    %69 = arith.andi %64, %68 : vector<8x256xi1>
    %c0_i32_19 = arith.constant 0 : i32
    %70 = vector.broadcast %c0_i32_19 : i32 to vector<8x256xi32>
    %71 = arith.addi %37, %70 : vector<8x256xi32>
    %c0_i32_20 = arith.constant 0 : i32
    %72 = vector.broadcast %c0_i32_20 : i32 to vector<8x256xi32>
    %73 = arith.cmpi sge, %71, %72 : vector<8x256xi32>
    %74 = arith.andi %69, %73 : vector<8x256xi1>
    %c0_i32_21 = arith.constant 0 : i32
    %75 = vector.broadcast %c0_i32_21 : i32 to vector<8x256xi32>
    %76 = arith.addi %37, %75 : vector<8x256xi32>
    %c16_i32_22 = arith.constant 16 : i32
    %77 = vector.broadcast %c16_i32_22 : i32 to vector<8x256xi32>
    %78 = arith.cmpi slt, %76, %77 : vector<8x256xi32>
    %79 = arith.andi %74, %78 : vector<8x256xi1>
    %cst_23 = arith.constant 0.000000e+00 : f32
    %80 = vector.broadcast %cst_23 : f32 to vector<8x256xf32>
    %81 = arith.select %79, %60, %80 : vector<8x256xi1>, vector<8x256xf32>
    %c15_i32 = arith.constant 15 : i32
    %82 = tpu.dynamic_rotate %15 by %c15_i32 dim 1 : vector<8x256xf32>, i32 -> vector<8x256xf32>
    %c-15_i32 = arith.constant -15 : i32
    %83 = vector.broadcast %c-15_i32 : i32 to vector<8x256xi32>
    %84 = arith.addi %21, %83 : vector<8x256xi32>
    %c0_i32_24 = arith.constant 0 : i32
    %85 = vector.broadcast %c0_i32_24 : i32 to vector<8x256xi32>
    %86 = arith.cmpi sge, %84, %85 : vector<8x256xi32>
    %c-15_i32_25 = arith.constant -15 : i32
    %87 = vector.broadcast %c-15_i32_25 : i32 to vector<8x256xi32>
    %88 = arith.addi %21, %87 : vector<8x256xi32>
    %c256_i32_26 = arith.constant 256 : i32
    %89 = vector.broadcast %c256_i32_26 : i32 to vector<8x256xi32>
    %90 = arith.cmpi slt, %88, %89 : vector<8x256xi32>
    %91 = arith.andi %86, %90 : vector<8x256xi1>
    %c1_i32_27 = arith.constant 1 : i32
    %92 = vector.broadcast %c1_i32_27 : i32 to vector<8x256xi32>
    %93 = arith.addi %37, %92 : vector<8x256xi32>
    %c0_i32_28 = arith.constant 0 : i32
    %94 = vector.broadcast %c0_i32_28 : i32 to vector<8x256xi32>
    %95 = arith.cmpi sge, %93, %94 : vector<8x256xi32>
    %96 = arith.andi %91, %95 : vector<8x256xi1>
    %c1_i32_29 = arith.constant 1 : i32
    %97 = vector.broadcast %c1_i32_29 : i32 to vector<8x256xi32>
    %98 = arith.addi %37, %97 : vector<8x256xi32>
    %c16_i32_30 = arith.constant 16 : i32
    %99 = vector.broadcast %c16_i32_30 : i32 to vector<8x256xi32>
    %100 = arith.cmpi slt, %98, %99 : vector<8x256xi32>
    %101 = arith.andi %96, %100 : vector<8x256xi1>
    %cst_31 = arith.constant 0.000000e+00 : f32
    %102 = vector.broadcast %cst_31 : f32 to vector<8x256xf32>
    %103 = arith.select %101, %82, %102 : vector<8x256xi1>, vector<8x256xf32>
    %c1_i32_32 = arith.constant 1 : i32
    %104 = tpu.dynamic_rotate %15 by %c1_i32_32 dim 1 : vector<8x256xf32>, i32 -> vector<8x256xf32>
    %c-1_i32_33 = arith.constant -1 : i32
    %105 = vector.broadcast %c-1_i32_33 : i32 to vector<8x256xi32>
    %106 = arith.addi %21, %105 : vector<8x256xi32>
    %c0_i32_34 = arith.constant 0 : i32
    %107 = vector.broadcast %c0_i32_34 : i32 to vector<8x256xi32>
    %108 = arith.cmpi sge, %106, %107 : vector<8x256xi32>
    %c-1_i32_35 = arith.constant -1 : i32
    %109 = vector.broadcast %c-1_i32_35 : i32 to vector<8x256xi32>
    %110 = arith.addi %21, %109 : vector<8x256xi32>
    %c256_i32_36 = arith.constant 256 : i32
    %111 = vector.broadcast %c256_i32_36 : i32 to vector<8x256xi32>
    %112 = arith.cmpi slt, %110, %111 : vector<8x256xi32>
    %113 = arith.andi %108, %112 : vector<8x256xi1>
    %c-1_i32_37 = arith.constant -1 : i32
    %114 = vector.broadcast %c-1_i32_37 : i32 to vector<8x256xi32>
    %115 = arith.addi %37, %114 : vector<8x256xi32>
    %c0_i32_38 = arith.constant 0 : i32
    %116 = vector.broadcast %c0_i32_38 : i32 to vector<8x256xi32>
    %117 = arith.cmpi sge, %115, %116 : vector<8x256xi32>
    %118 = arith.andi %113, %117 : vector<8x256xi1>
    %c-1_i32_39 = arith.constant -1 : i32
    %119 = vector.broadcast %c-1_i32_39 : i32 to vector<8x256xi32>
    %120 = arith.addi %37, %119 : vector<8x256xi32>
    %c16_i32_40 = arith.constant 16 : i32
    %121 = vector.broadcast %c16_i32_40 : i32 to vector<8x256xi32>
    %122 = arith.cmpi slt, %120, %121 : vector<8x256xi32>
    %123 = arith.andi %118, %122 : vector<8x256xi1>
    %cst_41 = arith.constant 0.000000e+00 : f32
    %124 = vector.broadcast %cst_41 : f32 to vector<8x256xf32>
    %125 = arith.select %123, %104, %124 : vector<8x256xi1>, vector<8x256xf32>
    %c255_i32 = arith.constant 255 : i32
    %126 = tpu.dynamic_rotate %15 by %c255_i32 dim 1 : vector<8x256xf32>, i32 -> vector<8x256xf32>
    %c1_i32_42 = arith.constant 1 : i32
    %127 = vector.broadcast %c1_i32_42 : i32 to vector<8x256xi32>
    %128 = arith.addi %21, %127 : vector<8x256xi32>
    %c0_i32_43 = arith.constant 0 : i32
    %129 = vector.broadcast %c0_i32_43 : i32 to vector<8x256xi32>
    %130 = arith.cmpi sge, %128, %129 : vector<8x256xi32>
    %c1_i32_44 = arith.constant 1 : i32
    %131 = vector.broadcast %c1_i32_44 : i32 to vector<8x256xi32>
    %132 = arith.addi %21, %131 : vector<8x256xi32>
    %c256_i32_45 = arith.constant 256 : i32
    %133 = vector.broadcast %c256_i32_45 : i32 to vector<8x256xi32>
    %134 = arith.cmpi slt, %132, %133 : vector<8x256xi32>
    %135 = arith.andi %130, %134 : vector<8x256xi1>
    %c1_i32_46 = arith.constant 1 : i32
    %136 = vector.broadcast %c1_i32_46 : i32 to vector<8x256xi32>
    %137 = arith.addi %37, %136 : vector<8x256xi32>
    %c0_i32_47 = arith.constant 0 : i32
    %138 = vector.broadcast %c0_i32_47 : i32 to vector<8x256xi32>
    %139 = arith.cmpi sge, %137, %138 : vector<8x256xi32>
    %140 = arith.andi %135, %139 : vector<8x256xi1>
    %c1_i32_48 = arith.constant 1 : i32
    %141 = vector.broadcast %c1_i32_48 : i32 to vector<8x256xi32>
    %142 = arith.addi %37, %141 : vector<8x256xi32>
    %c16_i32_49 = arith.constant 16 : i32
    %143 = vector.broadcast %c16_i32_49 : i32 to vector<8x256xi32>
    %144 = arith.cmpi slt, %142, %143 : vector<8x256xi32>
    %145 = arith.andi %140, %144 : vector<8x256xi1>
    %cst_50 = arith.constant 0.000000e+00 : f32
    %146 = vector.broadcast %cst_50 : f32 to vector<8x256xf32>
    %147 = arith.select %145, %126, %146 : vector<8x256xi1>, vector<8x256xf32>
    %c241_i32 = arith.constant 241 : i32
    %148 = tpu.dynamic_rotate %15 by %c241_i32 dim 1 : vector<8x256xf32>, i32 -> vector<8x256xf32>
    %c15_i32_51 = arith.constant 15 : i32
    %149 = vector.broadcast %c15_i32_51 : i32 to vector<8x256xi32>
    %150 = arith.addi %21, %149 : vector<8x256xi32>
    %c0_i32_52 = arith.constant 0 : i32
    %151 = vector.broadcast %c0_i32_52 : i32 to vector<8x256xi32>
    %152 = arith.cmpi sge, %150, %151 : vector<8x256xi32>
    %c15_i32_53 = arith.constant 15 : i32
    %153 = vector.broadcast %c15_i32_53 : i32 to vector<8x256xi32>
    %154 = arith.addi %21, %153 : vector<8x256xi32>
    %c256_i32_54 = arith.constant 256 : i32
    %155 = vector.broadcast %c256_i32_54 : i32 to vector<8x256xi32>
    %156 = arith.cmpi slt, %154, %155 : vector<8x256xi32>
    %157 = arith.andi %152, %156 : vector<8x256xi1>
    %c-1_i32_55 = arith.constant -1 : i32
    %158 = vector.broadcast %c-1_i32_55 : i32 to vector<8x256xi32>
    %159 = arith.addi %37, %158 : vector<8x256xi32>
    %c0_i32_56 = arith.constant 0 : i32
    %160 = vector.broadcast %c0_i32_56 : i32 to vector<8x256xi32>
    %161 = arith.cmpi sge, %159, %160 : vector<8x256xi32>
    %162 = arith.andi %157, %161 : vector<8x256xi1>
    %c-1_i32_57 = arith.constant -1 : i32
    %163 = vector.broadcast %c-1_i32_57 : i32 to vector<8x256xi32>
    %164 = arith.addi %37, %163 : vector<8x256xi32>
    %c16_i32_58 = arith.constant 16 : i32
    %165 = vector.broadcast %c16_i32_58 : i32 to vector<8x256xi32>
    %166 = arith.cmpi slt, %164, %165 : vector<8x256xi32>
    %167 = arith.andi %162, %166 : vector<8x256xi1>
    %cst_59 = arith.constant 0.000000e+00 : f32
    %168 = vector.broadcast %cst_59 : f32 to vector<8x256xf32>
    %169 = arith.select %167, %148, %168 : vector<8x256xi1>, vector<8x256xf32>
    %c240_i32 = arith.constant 240 : i32
    %170 = tpu.dynamic_rotate %15 by %c240_i32 dim 1 : vector<8x256xf32>, i32 -> vector<8x256xf32>
    %c16_i32_60 = arith.constant 16 : i32
    %171 = vector.broadcast %c16_i32_60 : i32 to vector<8x256xi32>
    %172 = arith.addi %21, %171 : vector<8x256xi32>
    %c0_i32_61 = arith.constant 0 : i32
    %173 = vector.broadcast %c0_i32_61 : i32 to vector<8x256xi32>
    %174 = arith.cmpi sge, %172, %173 : vector<8x256xi32>
    %c16_i32_62 = arith.constant 16 : i32
    %175 = vector.broadcast %c16_i32_62 : i32 to vector<8x256xi32>
    %176 = arith.addi %21, %175 : vector<8x256xi32>
    %c256_i32_63 = arith.constant 256 : i32
    %177 = vector.broadcast %c256_i32_63 : i32 to vector<8x256xi32>
    %178 = arith.cmpi slt, %176, %177 : vector<8x256xi32>
    %179 = arith.andi %174, %178 : vector<8x256xi1>
    %c0_i32_64 = arith.constant 0 : i32
    %180 = vector.broadcast %c0_i32_64 : i32 to vector<8x256xi32>
    %181 = arith.addi %37, %180 : vector<8x256xi32>
    %c0_i32_65 = arith.constant 0 : i32
    %182 = vector.broadcast %c0_i32_65 : i32 to vector<8x256xi32>
    %183 = arith.cmpi sge, %181, %182 : vector<8x256xi32>
    %184 = arith.andi %179, %183 : vector<8x256xi1>
    %c0_i32_66 = arith.constant 0 : i32
    %185 = vector.broadcast %c0_i32_66 : i32 to vector<8x256xi32>
    %186 = arith.addi %37, %185 : vector<8x256xi32>
    %c16_i32_67 = arith.constant 16 : i32
    %187 = vector.broadcast %c16_i32_67 : i32 to vector<8x256xi32>
    %188 = arith.cmpi slt, %186, %187 : vector<8x256xi32>
    %189 = arith.andi %184, %188 : vector<8x256xi1>
    %cst_68 = arith.constant 0.000000e+00 : f32
    %190 = vector.broadcast %cst_68 : f32 to vector<8x256xf32>
    %191 = arith.select %189, %170, %190 : vector<8x256xi1>, vector<8x256xf32>
    %c239_i32 = arith.constant 239 : i32
    %192 = tpu.dynamic_rotate %15 by %c239_i32 dim 1 : vector<8x256xf32>, i32 -> vector<8x256xf32>
    %c17_i32_69 = arith.constant 17 : i32
    %193 = vector.broadcast %c17_i32_69 : i32 to vector<8x256xi32>
    %194 = arith.addi %21, %193 : vector<8x256xi32>
    %c0_i32_70 = arith.constant 0 : i32
    %195 = vector.broadcast %c0_i32_70 : i32 to vector<8x256xi32>
    %196 = arith.cmpi sge, %194, %195 : vector<8x256xi32>
    %c17_i32_71 = arith.constant 17 : i32
    %197 = vector.broadcast %c17_i32_71 : i32 to vector<8x256xi32>
    %198 = arith.addi %21, %197 : vector<8x256xi32>
    %c256_i32_72 = arith.constant 256 : i32
    %199 = vector.broadcast %c256_i32_72 : i32 to vector<8x256xi32>
    %200 = arith.cmpi slt, %198, %199 : vector<8x256xi32>
    %201 = arith.andi %196, %200 : vector<8x256xi1>
    %c1_i32_73 = arith.constant 1 : i32
    %202 = vector.broadcast %c1_i32_73 : i32 to vector<8x256xi32>
    %203 = arith.addi %37, %202 : vector<8x256xi32>
    %c0_i32_74 = arith.constant 0 : i32
    %204 = vector.broadcast %c0_i32_74 : i32 to vector<8x256xi32>
    %205 = arith.cmpi sge, %203, %204 : vector<8x256xi32>
    %206 = arith.andi %201, %205 : vector<8x256xi1>
    %c1_i32_75 = arith.constant 1 : i32
    %207 = vector.broadcast %c1_i32_75 : i32 to vector<8x256xi32>
    %208 = arith.addi %37, %207 : vector<8x256xi32>
    %c16_i32_76 = arith.constant 16 : i32
    %209 = vector.broadcast %c16_i32_76 : i32 to vector<8x256xi32>
    %210 = arith.cmpi slt, %208, %209 : vector<8x256xi32>
    %211 = arith.andi %206, %210 : vector<8x256xi1>
    %cst_77 = arith.constant 0.000000e+00 : f32
    %212 = vector.broadcast %cst_77 : f32 to vector<8x256xf32>
    %213 = arith.select %211, %192, %212 : vector<8x256xi1>, vector<8x256xf32>
    %214 = tpu.concatenate %59, %81, %103, %125, %15, %147, %169, %191, %213 in 0 : vector<8x256xf32>, vector<8x256xf32>, vector<8x256xf32>, vector<8x256xf32>, vector<8x256xf32>, vector<8x256xf32>, vector<8x256xf32>, vector<8x256xf32>, vector<8x256xf32> -> vector<72x256xf32>
    %c0_78 = arith.constant 0 : index
    %c0_79 = arith.constant 0 : index
    %215 = vector.load %arg3[%c0_78, %c0_79] : memref<8x72xf32, #tpu.memory_space<vmem>>, vector<8x72xf32>
    %cst_80 = arith.constant dense<0.000000e+00> : vector<8x256xf32>
    %216 = tpu.matmul %215, %214, %cst_80 {dimension_numbers = #tpu.dot_dimension_numbers<[1], [0], [0], [1], [0, 0, 1, 1], [], []>} : vector<8x72xf32>, vector<72x256xf32>, vector<8x256xf32> -> vector<8x256xf32>
    %217 = vector.broadcast %7 : vector<8x1xf32> to vector<8x256xf32>
    %218 = arith.mulf %216, %217 : vector<8x256xf32>
    %219 = vector.broadcast %8 : vector<8x1xf32> to vector<8x256xf32>
    %220 = arith.addf %218, %219 : vector<8x256xf32>
    %cst_81 = arith.constant 0.000000e+00 : f32
    %221 = vector.broadcast %cst_81 : f32 to vector<8x256xf32>
    %222 = arith.maximumf %220, %221 : vector<8x256xf32>
    %cst_82 = arith.constant 0.000000e+00 : f32
    %223 = vector.broadcast %cst_82 : f32 to vector<8x1xf32>
    %224 = arith.maximumf %8, %223 : vector<8x1xf32>
    %225 = arith.addf %222, %20 : vector<8x256xf32>
    %cst_83 = arith.constant 0.000000e+00 : f32
    %226 = vector.broadcast %cst_83 : f32 to vector<8x256xf32>
    %227 = arith.maximumf %225, %226 : vector<8x256xf32>
    %228 = vector.broadcast %224 : vector<8x1xf32> to vector<8x256xf32>
    %229 = arith.addf %228, %20 : vector<8x256xf32>
    %cst_84 = arith.constant 0.000000e+00 : f32
    %230 = vector.broadcast %cst_84 : f32 to vector<8x256xf32>
    %231 = arith.maximumf %229, %230 : vector<8x256xf32>
    %c0_85 = arith.constant 0 : index
    %c0_86 = arith.constant 0 : index
    %c0_87 = arith.constant 0 : index
    %c0_88 = arith.constant 0 : index
    %232 = vector.load %arg5[%c0_85, %c0_86, %c0_87, %c0_88] : memref<1x3x8x256xf32, #tpu.memory_space<vmem>>, vector<1x1x8x256xf32>
    %233 = vector.shape_cast %232 : vector<1x1x8x256xf32> to vector<8x256xf32>
    %234 = vector.shape_cast %231 : vector<8x256xf32> to vector<1x1x8x256xf32>
    tpu.vector_store %arg5[%c0_85, %c0_86, %c0_87, %c0_88], %234 {strides = array<i32>} : memref<1x3x8x256xf32, #tpu.memory_space<vmem>>, vector<1x1x8x256xf32>,
    %c0_89 = arith.constant 0 : index
    %c1 = arith.constant 1 : index
    %c0_90 = arith.constant 0 : index
    %c0_91 = arith.constant 0 : index
    %235 = vector.load %arg5[%c0_89, %c1, %c0_90, %c0_91] : memref<1x3x8x256xf32, #tpu.memory_space<vmem>>, vector<1x1x8x256xf32>
    %236 = vector.shape_cast %235 : vector<1x1x8x256xf32> to vector<8x256xf32>
    %237 = vector.shape_cast %227 : vector<8x256xf32> to vector<1x1x8x256xf32>
    tpu.vector_store %arg5[%c0_89, %c1, %c0_90, %c0_91], %237 {strides = array<i32>} : memref<1x3x8x256xf32, #tpu.memory_space<vmem>>, vector<1x1x8x256xf32>,
    %c0_92 = arith.constant 0 : index
    %c2 = arith.constant 2 : index
    %c0_93 = arith.constant 0 : index
    %c0_94 = arith.constant 0 : index
    %238 = vector.load %arg5[%c0_92, %c2, %c0_93, %c0_94] : memref<1x3x8x256xf32, #tpu.memory_space<vmem>>, vector<1x1x8x256xf32>
    %239 = vector.shape_cast %238 : vector<1x1x8x256xf32> to vector<8x256xf32>
    %240 = vector.shape_cast %231 : vector<8x256xf32> to vector<1x1x8x256xf32>
    tpu.vector_store %arg5[%c0_92, %c2, %c0_93, %c0_94], %240 {strides = array<i32>} : memref<1x3x8x256xf32, #tpu.memory_space<vmem>>, vector<1x1x8x256xf32>,
    return
  }
  func.func @transform_0(%arg0: i32) -> (i32, i32, i32) {
    %c0_i32 = arith.constant 0 : i32
    %c0_i32_0 = arith.constant 0 : i32
    %c0_i32_1 = arith.constant 0 : i32
    return %arg0, %c0_i32, %c0_i32_0 : i32, i32, i32
  }
  func.func @transform_1(%arg0: i32) -> (i32, i32) {
    %c0_i32 = arith.constant 0 : i32
    %c0_i32_0 = arith.constant 0 : i32
    %c0_i32_1 = arith.constant 0 : i32
    return %c0_i32, %c0_i32_0 : i32, i32
  }
  func.func @transform_2(%arg0: i32) -> (i32, i32) {
    %c0_i32 = arith.constant 0 : i32
    %c0_i32_0 = arith.constant 0 : i32
    %c0_i32_1 = arith.constant 0 : i32
    return %c0_i32, %c0_i32_0 : i32, i32
  }
  func.func @transform_3(%arg0: i32) -> (i32, i32) {
    %c0_i32 = arith.constant 0 : i32
    %c0_i32_0 = arith.constant 0 : i32
    %c0_i32_1 = arith.constant 0 : i32
    return %c0_i32, %c0_i32_0 : i32, i32
  }
  func.func @transform_4(%arg0: i32) -> (i32, i32, i32, i32) {
    %c0_i32 = arith.constant 0 : i32
    %c0_i32_0 = arith.constant 0 : i32
    %c0_i32_1 = arith.constant 0 : i32
    %c0_i32_2 = arith.constant 0 : i32
    return %arg0, %c0_i32, %c0_i32_0, %c0_i32_1 : i32, i32, i32, i32
  }
}

</mosaic_0001>

<bundles_post_ra>
// kernel: residual_block_small.1
= control target key start
LH: loop header
LB: loop body
LE: loop exit
PB: predicated region body
PF: predicated region fallthrough
CT: control target
= control target key end

     0   :  { %s817_s15 = smov 0   ;;  %s931_s0 = inlined_call_operand.vmem [shape: f32[2,36,256], index: 0, kind: input, shape index: {}]   ;;  %s932_s1 = inlined_call_operand.vmem [shape: f32[16,36], index: 1, kind: input, shape index: {}]   ;;  %s933_s2 = inlined_call_operand.vmem [shape: f32[8,72], index: 2, kind: input, shape index: {}]   ;;  %s934_s3 = inlined_call_operand.vmem [shape: f32[8,6], index: 3, kind: input, shape index: {}]   ;;  %s935_s4 = inlined_call_operand.vmem [shape: f32[2,3,8,256], index: 4, kind: output, shape index: {}]  }
   0x1 LB: > { %s705_s16 = sadd.s32 4294967295, %s775_s15   ;;  %p709_p0 = scmp.ge.s32.totalorder %s775_s15, 1  ;;  %s775_s15 = sphi %s817_s15, %s14_s15  }
   0x2   : > { %p162_p1 = scmp.lt.s32.totalorder %s775_s15, 3 }
   0x4   : > { %p163_p2 = pnand %p709_p0, %p162_p1 }
   0x5   : > { %p188_p3 = scmp.lt.s32.totalorder (!%p163_p2), %s705_s16, 1  ;;  %s780_s25 = smov (!%p163_p2), 111  }
   0x6   : > { %166 = sbr.rel (%p163_p2) target bundleno = 579 (0x243), region = 36  ;;  %s781_s26 = smov (!%p163_p2), 112  }
   0x7   : > { %s782_s27 = smov (!%p163_p2), 113   ;;  %s783_s28 = smov (!%p163_p2), 127  }
   0x8   : > { %s784_s29 = smov (!%p163_p2), 1   ;;  %s785_s30 = smov (!%p163_p2), 15  }
   0x9   : > { %s786_s7 = smov (!%p163_p2), 16   ;;  %s789_s8 = smov (!%p163_p2), 17  }
   0xb   : > { %v777_v0 = vmov 0.0   ;;  %v778_v1 = vmov 0   ;;  %v828_v2 = vld [vmem:[%s934_s3] sm:$0xff]  ;;  %s937_s16 = smov (!%p188_p3, %s705_s16), 1  ;;  %vm217_vm0 = vcmask 1043456   ;;  %v779_v3 = vmov 1  }
   0xc   : > { %288 = vmatprep.mubr.f32.mxu0 %v777_v0  ;;  %762 = vset.pattern.permute.xlu0 %v778_v1  ;;  %s737_s19 = smul.u32 80, %s937_s16  ;;  %v198_v14 = vld [vmem:[%s932_s1] sm:$0xff]  ;;  %vm210_vm1 = vcmask 293888   ;;  %v199_v23 = vld [vmem:[%s932_s1 + $0x8] sm:$0xff]  ;;  %v787_v24 = vmov 2   ;;  %v788_v25 = vmov 4   ;;  %v327_v29 = vlaneseq }
   0xd   : > { %304 = vperm.xlu0 %762, %v828_v2   ;;  %607 = vmatprep.mubr.f32.mxu1 %v777_v0  ;;  %v628_v26 = vmax.f32 %v828_v2, 0.0  ;;  %v790_v27 = vmov 3   ;;  %v791_v28 = vmov 5   ;;  %s738_s11 = smul.u32 48, %s937_s16 }
   0xe   : > { %s192_s22 = scalar_lea.vmem %s931_s0, %s737_s19  ;;  %764 = vset.pattern.permute.xlu1 %v787_v24  ;;  %v871_v30 = vand.u32 127, %v327_v29 }
   0xf   : > { %v209_v4 = vld [vmem:[%s192_s22 + $0x48] sm:$0xf]  ;;  %v208_v5 = vld [vmem:[%s192_s22 + $0x40] sm:$0xf]  ;;  %v207_v6 = vld [vmem:[%s192_s22 + $0x38] sm:$0xff]  ;;  %s197_s14 = scalar_lea.vmem %s935_s4, %s738_s11 }
  0x10   : > { %712 = vmatprep.subr.msk.mxu0 %vm217_vm0, %v209_v4  ;;  %v206_v7 = vld [vmem:[%s192_s22 + $0x30] sm:$0xff]  ;;  %v205_v8 = vld [vmem:[%s192_s22 + $0x28] sm:$0xff]  ;;  %v204_v9 = vld [vmem:[%s192_s22 + $0x20] sm:$0xff]  ;;  %v329_v31 = vadd.s32 128, %v871_v30  ;;  %v334_v40 = vand.u32 15, %v871_v30  ;;  %vm521_vm4 = vcmp.lt.s32.totalorder %v871_v30, 111 }
  0x11   : > { %763 = vset.pattern.permute.xlu0 %v779_v3  ;;  %713 = vmatpush1.msk.msra.mxu0 %vm217_vm0, %v208_v5  ;;  %v203_v10 = vld [vmem:[%s192_s22 + $0x18] sm:$0xff]  ;;  %v202_v11 = vld [vmem:[%s192_s22 + $0x10] sm:$0xff]  ;;  %v201_v12 = vld [vmem:[%s192_s22 + $0x8] sm:$0xff]  ;;  %vm500_vm5 = vcmp.lt.s32.totalorder %v871_v30, 112  ;;  %vm479_vm11 = vcmp.lt.s32.totalorder %v871_v30, 113  ;;  %v440_v54 = vadd.s32 4294967295, %v871_v30 }
  0x12   : > { %310 = vperm.xlu0 %763, %v828_v2   ;;  %248 = vmatprep.subr.mxu0 %v207_v6  ;;  %v200_v13 = vld [vmem:[%s192_s22] sm:$0xff]  ;;  %v341_v34 = vand.u32 15, %v329_v31  ;;  %v525_v39 = vadd.s32 17, %v329_v31  ;;  %v421_v43 = vadd.s32 1, %v334_v40  ;;  %v483_v45 = vadd.s32 15, %v329_v31 }
  0x13   : > { %249 = vmatpush1.msra.mxu0 %v206_v7  ;;  %v504_v46 = vadd.s32 16, %v329_v31  ;;  %v462_v48 = vadd.s32 1, %v329_v31  ;;  %v369_v50 = vadd.s32 4294967295, %v334_v40  ;;  %vm458_vm14 = vcmp.lt.s32.totalorder %v871_v30, 127 }
  0x14   : > { %250 = vmatprep.subr.mxu0 %v205_v8  ;;  %v874_v37 = vadd.s32 1, %v341_v34  ;;  %vm529_vm3 = vcmp.lt.s32.totalorder %v525_v39, 256  ;;  %v878_v44 = vadd.s32 4294967295, %v341_v34  ;;  %vm427_vm7 = vcmp.lt.s32.totalorder %v421_v43, 16 }
  0x15   : > { %251 = vmatpush1.msra.mxu0 %v204_v9  ;;  %vm487_vm9 = vcmp.lt.s32.totalorder %v483_v45, 256  ;;  %vm508_vm10 = vcmp.lt.s32.totalorder %v504_v46, 256  ;;  %vm466_vm12 = vcmp.lt.s32.totalorder %v462_v48, 256  ;;  %vm371_vm15 = vcmp.ge.s32.totalorder %v369_v50, 0 }
  0x16   : > { %252 = vmatprep.subr.mxu0 %v203_v10  ;;  %765 = vset.pattern.permute.xlu0 %v788_v25  ;;  %vm428_vm2 = vcmp.lt.s32.totalorder %v874_v37, 16  ;;  %vm372_vm8 = vcmp.ge.s32.totalorder %v878_v44, 0  ;;  %v413_v59 = vadd.s32 4294967281, %v871_v30 }
  0x17   : > { %253 = vmatpush1.msra.mxu0 %v202_v11  ;;  %vm535_vm6 = vmand %vm529_vm3, %vm428_vm2  ;;  %vm437_vm3 = vcmp.lt.s32.totalorder %v871_v30, 1 }
  0x18   : > { %254 = vmatprep.subr.mxu0 %v201_v12  ;;  %vm491_vm13 = vmand %vm487_vm9, %vm372_vm8  ;;  %vm385_vm9 = vcmp.lt.s32.totalorder %v871_v30, 16 }
  0x19   : > { %255 = vmatpush1.msra.mxu0 %v200_v13  ;;  %vm472_vm0 = vmand %vm466_vm12, %vm428_vm2  ;;  %vm358_vm12 = vcmp.lt.s32.totalorder %v871_v30, 17 }
  0x1a   : > { %714 = vmatmul.mubr.msk.f32.vlgmr.msra.gmra.mxu0 %vm210_vm1, %v198_v14  ;;  %v538_v14 = vld [vmem:[%s933_s2] sm:$0xff] }
  0x1b   : > { %294 = vmatprep.mubr.f32.mxu0 %v777_v0  ;;  %v361_v0 = vadd.s32 4294967279, %v871_v30 }
  0x1e   : > { %715 = vmatmul.mubr.msk.f32.gmra.mxu0 %vm210_vm1, %v199_v23  ;;  %vm442_vm1 = vcmp.ge.s32.totalorder %v440_v54, 0 }
  0x88   : > { %v305_v15 = vpop.permute.xlu0 %304 }
  0x8d   : > { %v311_v17 = vpop.permute.xlu0 %310 }
  0xda   : > { %v290_v16 = vpop.f32.mrf.mxu0 }
  0xdb   : > { %v307_v18 = vmul.f32 %v305_v15, %v290_v16 }
  0xdc   : > { %v292_v19 = vpop.f32.mrf.mxu0 }
  0xdd   : > { %v842_v20 = vadd.f32 %v311_v17, %v307_v18  ;;  %v308_v21 = vmul.f32 %v305_v15, %v292_v19 }
  0xdf   : > { %v844_v22 = vadd.f32 %v311_v17, %v308_v21  ;;  %517 = vrot.lane.b32.xlu1 %v842_v20, %s780_s25  ;;  %v296_v17 = vpop.f32.mrf.mxu0 }
  0xe1   : > { %498 = vrot.lane.b32.xlu0 %v844_v22, %s781_s26  ;;  %v298_v19 = vpop.f32.mrf.mxu0 }
  0xe3   : > { %496 = vrot.lane.b32.xlu1 %v842_v20, %s781_s26 }
  0xe5   : > { %477 = vrot.lane.b32.xlu0 %v844_v22, %s782_s27 }
  0xe7   : > { %475 = vrot.lane.b32.xlu1 %v842_v20, %s782_s27 }
  0xe9   : > { %456 = vrot.lane.b32.xlu0 %v844_v22, %s783_s28 }
  0xeb   : > { %454 = vrot.lane.b32.xlu1 %v842_v20, %s783_s28 }
  0xed   : > { %435 = vrot.lane.b32.xlu0 %v844_v22, %s784_s29 }
  0xef   : > { %519 = vrot.lane.b32.xlu1 %v844_v22, %s780_s25 }
  0xf1   : > { %408 = vrot.lane.b32.xlu0 %v844_v22, %s785_s30 }
  0xf3   : > { %433 = vrot.lane.b32.xlu1 %v842_v20, %s784_s29 }
  0xf5   : > { %383 = vrot.lane.b32.xlu0 %v844_v22, %s786_s7 }
  0xf7   : > { %406 = vrot.lane.b32.xlu1 %v842_v20, %s785_s30 }
  0xf9   : > { %356 = vrot.lane.b32.xlu0 %v844_v22, %s789_s8 }
  0xfb   : > { %381 = vrot.lane.b32.xlu1 %v842_v20, %s786_s7 }
  0xfd   : > { %316 = vperm.xlu0 %765, %v828_v2  }
  0xff   : > { %354 = vrot.lane.b32.xlu1 %v842_v20, %s789_s8 }
 0x101   : > { %768 = vset.pattern.permute.xlu0 %v790_v27 }
 0x102   : > { %635 = vperm.xlu0 %768, %v628_v26  }
 0x103   : > { %615 = vperm.xlu1 %764, %v828_v2  }
 0x107   : > { %766 = vset.pattern.permute.xlu1 %v790_v27 }
 0x108   : > { %621 = vperm.xlu1 %766, %v828_v2  }
 0x10c   : > { %767 = vset.pattern.permute.xlu1 %v791_v28 }
 0x10d   : > { %322 = vperm.xlu1 %767, %v828_v2   ;;  %v388_v2 = vadd.s32 4294967280, %v871_v30 }
 0x151   : > { %v518_v32 = vpop.permute.xlu1 %517 }
 0x153   : > { %v499_v33 = vpop.permute.xlu0 %498 }
 0x155   : > { %v497_v35 = vpop.permute.xlu1 %496 }
 0x156   : > { %v502_v53 = vsel %vm500_vm5, %v499_v33, %v497_v35  ;;  %v501_v57 = vsel %vm500_vm5, %v497_v35, %v499_v33  ;;  %vm410_vm5 = vcmp.lt.s32.totalorder %v871_v30, 15 }
 0x157   : > { %v478_v36 = vpop.permute.xlu0 %477 }
 0x159   : > { %v476_v38 = vpop.permute.xlu1 %475 }
 0x15a   : > { %v481_v58 = vsel %vm479_vm11, %v478_v36, %v476_v38  ;;  %v480_v60 = vsel %vm479_vm11, %v476_v38, %v478_v36  ;;  %vm363_vm11 = vcmp.ge.s32.totalorder %v361_v0, 0 }
 0x15b   : > { %v457_v41 = vpop.permute.xlu0 %456 }
 0x15d   : > { %v455_v42 = vpop.permute.xlu1 %454 }
 0x15e   : > { %v460_v61 = vsel %vm458_vm14, %v457_v41, %v455_v42  ;;  %v459_v62 = vsel %vm458_vm14, %v455_v42, %v457_v41  ;;  %vm373_vm14 = vmand %vm363_vm11, %vm371_vm15 }
 0x15f   : > { %v436_v47 = vpop.permute.xlu0 %435 }
 0x161   : > { %v520_v49 = vpop.permute.xlu1 %519 }
 0x162   : > { %v523_v51 = vsel %vm521_vm4, %v520_v49, %v518_v32  ;;  %v522_v52 = vsel %vm521_vm4, %v518_v32, %v520_v49  ;;  %vm415_vm4 = vcmp.ge.s32.totalorder %v413_v59, 0 }
 0x163   : > { %716 = vmatprep.subr.msk.mxu1 %vm535_vm6, %v523_v51  ;;  %v409_v55 = vpop.permute.xlu0 %408  ;;  %vm448_vm6 = vmand %vm442_vm1, %vm371_vm15 }
 0x164   : > { %717 = vmatpush1.msk.msra.mxu1 %vm427_vm7, %v522_v52 }
 0x165   : > { %718 = vmatprep.subr.msk.mxu1 %vm508_vm10, %v502_v53  ;;  %v434_v56 = vpop.permute.xlu1 %433  ;;  %vm429_vm10 = vmand %vm415_vm4, %vm427_vm7 }
 0x166   : > { %560 = vmatpush1.msra.mxu1 %v501_v57  ;;  %v438_v3 = vsel %vm437_vm3, %v434_v56, %v436_v47  ;;  %v439_v4 = vsel %vm437_vm3, %v436_v47, %v434_v56 }
 0x167   : > { %719 = vmatprep.subr.msk.mxu1 %vm491_vm13, %v481_v58  ;;  %v384_v1 = vpop.permute.xlu0 %383  ;;  %vm390_vm13 = vcmp.ge.s32.totalorder %v388_v2, 0 }
 0x168   : > { %720 = vmatpush1.msk.msra.mxu1 %vm371_vm15, %v480_v60 }
 0x169   : > { %721 = vmatprep.subr.msk.mxu1 %vm472_vm0, %v460_v61  ;;  %v407_v63 = vpop.permute.xlu1 %406 }
 0x16a   : > { %722 = vmatpush1.msk.msra.mxu1 %vm427_vm7, %v459_v62  ;;  %v411_v6 = vsel %vm410_vm5, %v407_v63, %v409_v55  ;;  %v412_v7 = vsel %vm410_vm5, %v409_v55, %v407_v63 }
 0x16b   : > { %565 = vmatprep.subr.mxu1 %v844_v22  ;;  %v357_v9 = vpop.permute.xlu0 %356 }
 0x16c   : > { %566 = vmatpush1.msra.mxu1 %v842_v20 }
 0x16d   : > { %723 = vmatprep.subr.msk.mxu1 %vm372_vm8, %v438_v3  ;;  %v382_v5 = vpop.permute.xlu1 %381 }
 0x16e   : > { %724 = vmatpush1.msk.msra.mxu1 %vm448_vm6, %v439_v4  ;;  %v386_v8 = vsel %vm385_vm9, %v382_v5, %v384_v1  ;;  %v387_v10 = vsel %vm385_vm9, %v384_v1, %v382_v5 }
 0x16f   : > { %725 = vmatprep.subr.msk.mxu1 %vm428_vm2, %v411_v6  ;;  %vm539_vm2 = vcmask 588800  }
 0x170   : > { %726 = vmatpush1.msk.msra.mxu1 %vm429_vm10, %v412_v7 }
 0x171   : > { %571 = vmatprep.subr.mxu1 %v386_v8  ;;  %v355_v11 = vpop.permute.xlu1 %354 }
 0x172   : > { %v359_v12 = vsel %vm358_vm12, %v355_v11, %v357_v9  ;;  %v360_v13 = vsel %vm358_vm12, %v357_v9, %v355_v11  ;;  %727 = vmatpush1.msk.msra.mxu1 %vm390_vm13, %v387_v10 }
 0x173   : > { %728 = vmatprep.subr.msk.mxu1 %vm372_vm8, %v359_v12 }
 0x174   : > { %729 = vmatpush1.msk.msra.mxu1 %vm373_vm14, %v360_v13 }
 0x175   : > { %730 = vmatmul.mubr.msk.f32.vlgmr.msra.gmra.mxu1 %vm539_vm2, %v538_v14 }
 0x178   : > { %v317_v18 = vpop.permute.xlu0 %316 }
 0x179   : > { %v319_v20 = vmul.f32 %v317_v18, %v296_v17  ;;  %v320_v21 = vmul.f32 %v317_v18, %v298_v19 }
 0x17d   : > { %v636_v25 = vpop.permute.xlu0 %635 }
 0x17e   : > { %v616_v15 = vpop.permute.xlu1 %615 }
 0x183   : > { %v622_v16 = vpop.permute.xlu1 %621 }
 0x188   : > { %v323_v22 = vpop.permute.xlu1 %322 }
 0x189   : > { %v325_v23 = vadd.f32 %v323_v22, %v319_v20  ;;  %v326_v24 = vadd.f32 %v323_v22, %v320_v21 }
 0x18b   : > { %v638_v26 = vadd.f32 %v636_v25, %v325_v23  ;;  %v639_v27 = vadd.f32 %v636_v25, %v326_v24 }
 0x18d   : > { %v640_v28 = vmax.f32 %v638_v26, 0.0  ;;  %v641_v29 = vmax.f32 %v639_v27, 0.0 }
 0x18f   : > { %642 = vst [vmem:[%s197_s14] sm:$0xff] %v640_v28  ;;  %643 = vst [vmem:[%s197_s14 + $0x8] sm:$0xff] %v641_v29 }
 0x190   : > { %733 = vst [vmem:[%s197_s14 + $0x20] sm:$0xff] %v640_v28  ;;  %734 = vst [vmem:[%s197_s14 + $0x28] sm:$0xff] %v641_v29 }
 0x235   : > { %v609_v30 = vpop.f32.mrf.mxu1 }
 0x236   : > { %v618_v31 = vmul.f32 %v616_v15, %v609_v30 }
 0x237   : > { %v611_v32 = vpop.f32.mrf.mxu1 }
 0x238   : > { %v624_v33 = vadd.f32 %v622_v16, %v618_v31  ;;  %v619_v34 = vmul.f32 %v616_v15, %v611_v32 }
 0x23a   : > { %v626_v35 = vmax.f32 %v624_v33, 0.0  ;;  %v625_v36 = vadd.f32 %v622_v16, %v619_v34 }
 0x23c   : > { %v627_v37 = vmax.f32 %v625_v36, 0.0  ;;  %v629_v38 = vadd.f32 %v626_v35, %v325_v23 }
 0x23e   : > { %v630_v39 = vadd.f32 %v627_v37, %v326_v24  ;;  %v631_v40 = vmax.f32 %v629_v38, 0.0 }
 0x240   : > { %v632_v41 = vmax.f32 %v630_v39, 0.0  ;;  %731 = vst [vmem:[%s197_s14 + $0x10] sm:$0xff] %v631_v40 }
 0x242   : > { %732 = vst [vmem:[%s197_s14 + $0x18] sm:$0xff] %v632_v41 }
 0x243 PF: > { %s14_s15 = sadd.s32 1, %s775_s15  }
 0x244   : > { %p11_p4 = scmp.ge.s32.totalorder %s14_s15, 4  }
 0x246   :  { %13 = sbr.rel (!%p11_p4) target bundleno = 1 (0x1), region = 68 }

</bundles_post_ra>
